<compile_context>
chip_gen: v7x
topology: tpu7x:2x2x1
jax: 0.10.0
libtpu: 0.0.40
codegen_flags: <defaults>
</compile_context>

<pallas_src>
import functools

import jax
import jax.numpy as jnp
from jax.experimental import pallas as pl
from jax.experimental.pallas import tpu as pltpu

HIDDEN = 256      # fc1 / fc2 width (matches the PyTorch module)
LANE = 128
SUBLANE = 8


def _round_up(x, m):
    return (x + m - 1) // m * m


def value_kernel(s_ref, wb1_ref, wb2_ref, wb3_ref, o_ref, *, in_pad):
    # layer 1: relu(state @ W1 + b1)   (weight rows [0:in_pad], bias row in_pad)
    x = jnp.dot(s_ref[...], wb1_ref[:in_pad, :],
                preferred_element_type=jnp.float32)
    x = jnp.maximum(x + wb1_ref[in_pad:in_pad + 1, :], 0.0)
    # layer 2: relu(x @ W2 + b2)
    x = jnp.dot(x, wb2_ref[:HIDDEN, :], preferred_element_type=jnp.float32)
    x = jnp.maximum(x + wb2_ref[HIDDEN:HIDDEN + 1, :], 0.0)
    # layer 3 (no activation) -> lane-dense padded output slab
    y = jnp.dot(x, wb3_ref[:HIDDEN, :], preferred_element_type=jnp.float32)
    o_ref[...] = y + wb3_ref[HIDDEN:HIDDEN + 1, :]


def value_forward(state, params, output_dim):
    """state: [B, input_dim] f32.  Returns [B, output_dim] f32."""
    wb1, wb2, wb3 = params
    B, in_dim = state.shape
    in_pad = wb1.shape[0] - SUBLANE        # padded fc1 fan-in
    out_pad = wb3.shape[1]                 # lane-padded fc3 fan-out

    # Pad batch to a tile multiple and input columns to in_pad (zeros are
    # multiplied by zero weight rows, so they contribute nothing).
    TB = min(_round_up(max(B, 1), SUBLANE), 256)
    B_pad = _round_up(max(B, 1), TB)
    state_p = jnp.zeros((B_pad, in_pad), jnp.float32).at[:B, :in_dim].set(state)

    grid = (B_pad // TB,)
    flops = 2 * B_pad * (in_pad * HIDDEN + HIDDEN * HIDDEN + HIDDEN * out_pad)
    bytes_accessed = 4 * (state_p.size + wb1.size + wb2.size + wb3.size
                          + B_pad * out_pad)

    out = pl.pallas_call(
        functools.partial(value_kernel, in_pad=in_pad),
        out_shape=jax.ShapeDtypeStruct((B_pad, out_pad), jnp.float32),
        grid=grid,
        in_specs=[
            pl.BlockSpec((TB, in_pad), lambda i: (i, 0)),     # state tile streams
            pl.BlockSpec(wb1.shape, lambda i: (0, 0)),        # weights stay resident
            pl.BlockSpec(wb2.shape, lambda i: (0, 0)),
            pl.BlockSpec(wb3.shape, lambda i: (0, 0)),
        ],
        out_specs=pl.BlockSpec((TB, out_pad), lambda i: (i, 0)),
        compiler_params=pltpu.CompilerParams(
            dimension_semantics=("parallel",)),
        cost_estimate=pl.CostEstimate(
            flops=flops, transcendentals=0, bytes_accessed=bytes_accessed),
    )(state_p, wb1, wb2, wb3)

    return out[:B, :output_dim]


def init_params(key, input_dim, output_dim, init_w=0.003):
    """PyTorch-style init: fc1/fc2 use the default nn.Linear init
    U(-1/sqrt(fan_in), 1/sqrt(fan_in)); fc3 uses U(-init_w, init_w).
    Each layer is packed into one [K_pad + 8, N_pad] f32 slab with the weight
    (stored [in, out]) in rows [0:fan_in] and the bias in row K_pad."""
    ks = jax.random.split(key, 6)
    in_pad = _round_up(input_dim, SUBLANE)
    out_pad = _round_up(output_dim, LANE)

    def pack(kw, kb, fan_in, fan_out, k_pad, n_pad, bound):
        w = jax.random.uniform(kw, (fan_in, fan_out), jnp.float32, -bound, bound)
        b = jax.random.uniform(kb, (fan_out,), jnp.float32, -bound, bound)
        slab = jnp.zeros((k_pad + SUBLANE, n_pad), jnp.float32)
        slab = slab.at[:fan_in, :fan_out].set(w)
        slab = slab.at[k_pad, :fan_out].set(b)
        return slab

    wb1 = pack(ks[0], ks[1], input_dim, HIDDEN, in_pad, HIDDEN,
               1.0 / (input_dim ** 0.5))
    wb2 = pack(ks[2], ks[3], HIDDEN, HIDDEN, HIDDEN, HIDDEN,
               1.0 / (HIDDEN ** 0.5))
    wb3 = pack(ks[4], ks[5], HIDDEN, output_dim, HIDDEN, out_pad, init_w)
    return (wb1, wb2, wb3)


def value_forward_ref(state, params, output_dim):
    """Pure-JAX reference for correctness checking."""
    wb1, wb2, wb3 = params
    in_dim = state.shape[1]
    in_pad = wb1.shape[0] - SUBLANE
    w1, b1 = wb1[:in_dim, :], wb1[in_pad, :]
    w2, b2 = wb2[:HIDDEN, :], wb2[HIDDEN, :]
    w3, b3 = wb3[:HIDDEN, :output_dim], wb3[HIDDEN, :output_dim]
    x = jnp.maximum(state @ w1 + b1, 0.0)
    x = jnp.maximum(x @ w2 + b2, 0.0)
    return x @ w3 + b3


if __name__ == "__main__":
    key = jax.random.PRNGKey(0)
    k_state, k_params = jax.random.split(key)

    batch = 8
    input_dim = 16
    output_dim = 8

    state = jax.random.normal(k_state, (batch, input_dim), jnp.float32)
    params = init_params(k_params, input_dim, output_dim)

    out = value_forward(state, params, output_dim)
    jax.block_until_ready(out)

    out_ref = value_forward_ref(state, params, output_dim)
    assert out.shape == (batch, output_dim)
    assert jnp.allclose(out, out_ref, atol=1e-5, rtol=1e-5)

    print("KERNEL_OK")
</pallas_src>

<mosaic_0001>
module attributes {stable_mosaic.version = 11 : i64} {
  func.func @value_kernel(%arg0: i32, %arg1: memref<8x16xf32, #tpu.memory_space<vmem>>, %arg2: memref<24x256xf32, #tpu.memory_space<vmem>>, %arg3: memref<264x256xf32, #tpu.memory_space<vmem>>, %arg4: memref<264x128xf32, #tpu.memory_space<vmem>>, %arg5: memref<8x128xf32, #tpu.memory_space<vmem>>) attributes {dimension_semantics = [#tpu.dimension_semantics<parallel>], iteration_bounds = array<i64: 1>, scalar_prefetch = 0 : i64, scratch_operands = 0 : i64, tpu.core_type = #tpu.core_type<tc>, window_params = [{transform_indices = @transform_0, window_bounds = array<i64: 8, 16>}, {pipeline_mode = #tpu.pipeline_mode<synchronous>, transform_indices = @transform_1, window_bounds = array<i64: 24, 256>}, {pipeline_mode = #tpu.pipeline_mode<synchronous>, transform_indices = @transform_2, window_bounds = array<i64: 264, 256>}, {pipeline_mode = #tpu.pipeline_mode<synchronous>, transform_indices = @transform_3, window_bounds = array<i64: 264, 128>}, {transform_indices = @transform_4, window_bounds = array<i64: 8, 128>}]} {
    %c0 = arith.constant 0 : index
    %c0_0 = arith.constant 0 : index
    %0 = vector.load %arg1[%c0, %c0_0] : memref<8x16xf32, #tpu.memory_space<vmem>>, vector<8x16xf32>
    %c0_1 = arith.constant 0 : index
    %c0_2 = arith.constant 0 : index
    %1 = vector.load %arg2[%c0_1, %c0_2] : memref<24x256xf32, #tpu.memory_space<vmem>>, vector<16x256xf32>
    %cst = arith.constant dense<0.000000e+00> : vector<8x256xf32>
    %2 = tpu.matmul %0, %1, %cst {dimension_numbers = #tpu.dot_dimension_numbers<[1], [0], [0], [1], [0, 0, 1, 1], [], []>} : vector<8x16xf32>, vector<16x256xf32>, vector<8x256xf32> -> vector<8x256xf32>
    %c16 = arith.constant 16 : index
    %c0_3 = arith.constant 0 : index
    %3 = vector.load %arg2[%c16, %c0_3] : memref<24x256xf32, #tpu.memory_space<vmem>>, vector<1x256xf32>
    %4 = vector.broadcast %3 : vector<1x256xf32> to vector<8x256xf32>
    %5 = arith.addf %2, %4 : vector<8x256xf32>
    %cst_4 = arith.constant 0.000000e+00 : f32
    %6 = vector.broadcast %cst_4 : f32 to vector<8x256xf32>
    %7 = arith.maximumf %5, %6 : vector<8x256xf32>
    %c0_5 = arith.constant 0 : index
    %c0_6 = arith.constant 0 : index
    %8 = vector.load %arg3[%c0_5, %c0_6] : memref<264x256xf32, #tpu.memory_space<vmem>>, vector<256x256xf32>
    %cst_7 = arith.constant dense<0.000000e+00> : vector<8x256xf32>
    %9 = tpu.matmul %7, %8, %cst_7 {dimension_numbers = #tpu.dot_dimension_numbers<[1], [0], [0], [1], [0, 0, 1, 1], [], []>} : vector<8x256xf32>, vector<256x256xf32>, vector<8x256xf32> -> vector<8x256xf32>
    %c256 = arith.constant 256 : index
    %c0_8 = arith.constant 0 : index
    %10 = vector.load %arg3[%c256, %c0_8] : memref<264x256xf32, #tpu.memory_space<vmem>>, vector<1x256xf32>
    %11 = vector.broadcast %10 : vector<1x256xf32> to vector<8x256xf32>
    %12 = arith.addf %9, %11 : vector<8x256xf32>
    %cst_9 = arith.constant 0.000000e+00 : f32
    %13 = vector.broadcast %cst_9 : f32 to vector<8x256xf32>
    %14 = arith.maximumf %12, %13 : vector<8x256xf32>
    %c0_10 = arith.constant 0 : index
    %c0_11 = arith.constant 0 : index
    %15 = vector.load %arg4[%c0_10, %c0_11] : memref<264x128xf32, #tpu.memory_space<vmem>>, vector<256x128xf32>
    %cst_12 = arith.constant dense<0.000000e+00> : vector<8x128xf32>
    %16 = tpu.matmul %14, %15, %cst_12 {dimension_numbers = #tpu.dot_dimension_numbers<[1], [0], [0], [1], [0, 0, 1, 1], [], []>} : vector<8x256xf32>, vector<256x128xf32>, vector<8x128xf32> -> vector<8x128xf32>
    %c256_13 = arith.constant 256 : index
    %c0_14 = arith.constant 0 : index
    %17 = vector.load %arg4[%c256_13, %c0_14] : memref<264x128xf32, #tpu.memory_space<vmem>>, vector<1x128xf32>
    %18 = vector.broadcast %17 : vector<1x128xf32> to vector<8x128xf32>
    %19 = arith.addf %16, %18 : vector<8x128xf32>
    %c0_15 = arith.constant 0 : index
    %c0_16 = arith.constant 0 : index
    %20 = vector.load %arg5[%c0_15, %c0_16] : memref<8x128xf32, #tpu.memory_space<vmem>>, vector<8x128xf32>
    tpu.vector_store %arg5[%c0_15, %c0_16], %19 {strides = array<i32>} : memref<8x128xf32, #tpu.memory_space<vmem>>, vector<8x128xf32>,
    return
  }
  func.func @transform_0(%arg0: i32) -> (i32, i32) {
    %c0_i32 = arith.constant 0 : i32
    %c0_i32_0 = arith.constant 0 : i32
    return %arg0, %c0_i32 : i32, i32
  }
  func.func @transform_1(%arg0: i32) -> (i32, i32) {
    %c0_i32 = arith.constant 0 : i32
    %c0_i32_0 = arith.constant 0 : i32
    %c0_i32_1 = arith.constant 0 : i32
    return %c0_i32, %c0_i32_0 : i32, i32
  }
  func.func @transform_2(%arg0: i32) -> (i32, i32) {
    %c0_i32 = arith.constant 0 : i32
    %c0_i32_0 = arith.constant 0 : i32
    %c0_i32_1 = arith.constant 0 : i32
    return %c0_i32, %c0_i32_0 : i32, i32
  }
  func.func @transform_3(%arg0: i32) -> (i32, i32) {
    %c0_i32 = arith.constant 0 : i32
    %c0_i32_0 = arith.constant 0 : i32
    %c0_i32_1 = arith.constant 0 : i32
    return %c0_i32, %c0_i32_0 : i32, i32
  }
  func.func @transform_4(%arg0: i32) -> (i32, i32) {
    %c0_i32 = arith.constant 0 : i32
    %c0_i32_0 = arith.constant 0 : i32
    return %arg0, %c0_i32 : i32, i32
  }
}

</mosaic_0001>

<bundles_post_ra>
// kernel: tpu_custom_call.1
= control target key start
LH: loop header
LB: loop body
LE: loop exit
PB: predicated region body
PF: predicated region fallthrough
CT: control target
= control target key end

     0   :  { %9 = vsyncpa [#allocation3], 0  ;;  %s807_s0 = inlined_call_operand.hbm [shape: f32[8,16], index: 0, kind: input, shape index: {}]   ;;  %s808_s1 = inlined_call_operand.hbm [shape: f32[24,256], index: 1, kind: input, shape index: {}]   ;;  %s809_s2 = inlined_call_operand.hbm [shape: f32[264,256], index: 2, kind: input, shape index: {}]   ;;  %s810_s3 = inlined_call_operand.hbm [shape: f32[264,128], index: 3, kind: input, shape index: {}]   ;;  %s811_s4 = inlined_call_operand.hbm [shape: f32[8,128], index: 4, kind: output, shape index: {}]  }
   0x1   :  { %10 = vsyncpa [#allocation6], 0 }
   0x2   :  { %11 = vsyncpa [#allocation9], 0 }
   0x3   :  { %12 = vsyncpa [#allocation4], 0  ;;  %s706_s15 = smov [#allocation5]   ;;  %s588_s19 = scalar_lea.hbm %s808_s1, 768 }
   0x4   :  { %s28_s16 = sshll.u32 %s706_s15, 4  ;;  %p589_p0 = scmp.ne.s32.totalorder %s808_s1, %s588_s19  ;;  %s29_s16 = int_to_ptr.vmem [resolvable:$true] %s28_s16 }
   0x5   :  { %p592_p1 = scmp.lt.u32.totalorder %s588_s19, %s808_s1 }
   0x7   :  { %p594_p2 = pnand %p592_p1, %p589_p0 }
   0x9   :  { %597 = shalt.err (!%p594_p2)
}
   0xa   :  { %s598_s24 = scalar_lea.vmem %s29_s16, 768  ;;  %p603_p4 = scmp.lt.s32.totalorder %s29_s16, %s29_s16 }
   0xb   :  { %p599_p3 = scmp.ne.s32.totalorder %s29_s16, %s598_s24  ;;  %p604_p5 = scmp.lt.s32.totalorder %s598_s24, %s598_s24 }
   0xd   :  { %p605_p6 = por %p604_p5, %p603_p4 }
   0xf   :  { %p606_p7 = pnand %p605_p6, %p599_p3 }
  0x11   :  { %609 = shalt.err (!%p606_p7)
}
  0x12   :  { %s707_s25 = smov 256   ;;  %s708_s26 = smov 16  }
  0x13   :  { %34 = dma.hbm_to_vmem [thread:$0]  %s808_s1, 768, %s29_s16, [#allocation6], %s707_s25, %s707_s25, %s708_s26  }
  0x14   :  { %s709_s29 = smov [#allocation2]   ;;  %s710_s5 = smov [#allocation7]  }
  0x15   :  { %s19_s30 = sshll.u32 %s709_s29, 4  ;;  %s40_s6 = sshll.u32 %s710_s5, 4  ;;  %s20_s30 = int_to_ptr.vmem [resolvable:$true] %s19_s30  ;;  %s41_s6 = int_to_ptr.vmem [resolvable:$true] %s40_s6 }
  0x16   :  { %s610_s9 = scalar_lea.hbm %s807_s0, 128 }
  0x17   :  { %p611_p8 = scmp.ne.s32.totalorder %s807_s0, %s610_s9  ;;  %p614_p9 = scmp.lt.u32.totalorder %s610_s9, %s807_s0 }
  0x19   :  { %p616_p10 = pnand %p614_p9, %p611_p8 }
  0x1b   :  { %619 = shalt.err (!%p616_p10)
}
  0x1c   :  { %s620_s1 = scalar_lea.vmem %s20_s30, 128  ;;  %p625_p12 = scmp.lt.s32.totalorder %s20_s30, %s20_s30 }
  0x1d   :  { %p621_p11 = scmp.ne.s32.totalorder %s20_s30, %s620_s1  ;;  %p626_p13 = scmp.lt.s32.totalorder %s620_s1, %s620_s1 }
  0x1f   :  { %p627_p0 = por %p626_p13, %p625_p12 }
  0x21   :  { %p628_p1 = pnand %p627_p0, %p621_p11 }
  0x23   :  { %631 = shalt.err (!%p628_p1)
}
  0x24   :  { %22 = dma.hbm_to_vmem [thread:$0]  %s807_s0, 128, %s20_s30, [#allocation3]  }
  0x25   :  { %s632_s18 = scalar_lea.hbm %s809_s2, 8448 }
  0x26   :  { %p633_p2 = scmp.ne.s32.totalorder %s809_s2, %s632_s18  ;;  %p636_p3 = scmp.lt.u32.totalorder %s632_s18, %s809_s2 }
  0x28   :  { %p638_p4 = pnand %p636_p3, %p633_p2 }
  0x2a   :  { %641 = shalt.err (!%p638_p4)
}
  0x2b   :  { %s642_s23 = scalar_lea.vmem %s41_s6, 8448  ;;  %p647_p6 = scmp.lt.s32.totalorder %s41_s6, %s41_s6 }
  0x2c   :  { %p643_p5 = scmp.ne.s32.totalorder %s41_s6, %s642_s23  ;;  %p648_p7 = scmp.lt.s32.totalorder %s642_s23, %s642_s23 }
  0x2e   :  { %p649_p8 = por %p648_p7, %p647_p6 }
  0x30   :  { %p650_p9 = pnand %p649_p8, %p643_p5 }
  0x32   :  { %653 = shalt.err (!%p650_p9)
}
  0x33   :  { %46 = dma.hbm_to_vmem [thread:$0]  %s809_s2, 8448, %s41_s6, [#allocation6], %s707_s25, %s707_s25, %s708_s26  }
  0x34   :  { %s711_s27 = smov [#allocation8]   ;;  %s654_s5 = scalar_lea.hbm %s810_s3, 4224 }
  0x35   :  { %s52_s28 = sshll.u32 %s711_s27, 4  ;;  %p655_p10 = scmp.ne.s32.totalorder %s810_s3, %s654_s5  ;;  %s53_s28 = int_to_ptr.vmem [resolvable:$true] %s52_s28 }
  0x36   :  { %p658_p11 = scmp.lt.u32.totalorder %s654_s5, %s810_s3 }
  0x38   :  { %p660_p12 = pnand %p658_p11, %p655_p10 }
  0x3a   :  { %663 = shalt.err (!%p660_p12)
}
  0x3b   :  { %s664_s11 = scalar_lea.vmem %s53_s28, 4224  ;;  %p669_p0 = scmp.lt.s32.totalorder %s53_s28, %s53_s28 }
  0x3c   :  { %p665_p13 = scmp.ne.s32.totalorder %s53_s28, %s664_s11  ;;  %p670_p1 = scmp.lt.s32.totalorder %s664_s11, %s664_s11 }
  0x3e   :  { %p671_p2 = por %p670_p1, %p669_p0 }
  0x40   :  { %p672_p3 = pnand %p671_p2, %p665_p13 }
  0x42   :  { %675 = shalt.err (!%p672_p3)
}
  0x43   :  { %s712_s2 = smov 128   ;;  %s713_s25 = smov 8  }
  0x44   :  { %58 = dma.hbm_to_vmem [thread:$0]  %s810_s3, 4224, %s53_s28, [#allocation9], %s712_s2, %s712_s2, %s713_s25  }
  0x45   :  { %698 = dma.done.wait [#allocation3], 128  }
  0x46   :  { %699 = vsyncadd [#allocation3], 4294967168 }
  0x47   :  { %700 = dma.done.wait [#allocation6], 9216  }
  0x48   :  { %701 = vsyncadd [#allocation6], 4294958080 }
  0x49   :  { %702 = dma.done.wait [#allocation9], 4224  }
  0x4a   :  { %703 = vsyncadd [#allocation9], 4294963072  ;;  %v714_v0 = vmov 0.0   ;;  %v73_v1 = vld [vmem:[#allocation5 + $0x8] sm:$0xff]  ;;  %v75_v2 = vld [vmem:[#allocation5 + $0x18] sm:$0xff]  ;;  %vm89_vm0 = vcmask 130048  }
  0x4b   :  { %157 = vmatprep.mubr.f32.mxu0 %v714_v0  ;;  %v72_v3 = vld [vmem:[#allocation5] sm:$0xff]  ;;  %v478_v4 = vpack.c.bf16 %v75_v2, %v73_v1  ;;  %v74_v5 = vld [vmem:[#allocation5 + $0x10] sm:$0xff]  ;;  %v167_v6 = vld [vmem:[#allocation7 + $0x8] sm:$0xff]  ;;  %s715_s3 = smov [#allocation10]  }
  0x4c   :  { %v480_v7 = vpack.c.bf16 %v74_v5, %v72_v3  ;;  %v71_v8 = vld [vmem:[#allocation2] sm:$0xff]  ;;  %v169_v9 = vld [vmem:[#allocation7 + $0x18] sm:$0xff]  ;;  %v166_v10 = vld [vmem:[#allocation7] sm:$0xff]  ;;  %s430_s12 = sshll.u32 %s715_s3, 4  ;;  %s431_s12 = int_to_ptr.vmem [resolvable:$true] %s430_s12 }
  0x4d   :  { %v168_v11 = vld [vmem:[#allocation7 + $0x10] sm:$0xff]  ;;  %479 = vmatprep.subr.bf16.mxu0 %v478_v4  ;;  %v482_v12 = vpack.c.bf16 %v169_v9, %v167_v6  ;;  %v171_v14 = vld [vmem:[#allocation7 + $0x28] sm:$0xff]  ;;  %v173_v15 = vld [vmem:[#allocation7 + $0x38] sm:$0xff]  ;;  %s676_s13 = scalar_lea.vmem %s431_s12, 128  ;;  %p681_p5 = scmp.lt.s32.totalorder %s431_s12, %s431_s12 }
  0x4e   :  { %v484_v13 = vpack.c.bf16 %v168_v11, %v166_v10  ;;  %v170_v16 = vld [vmem:[#allocation7 + $0x20] sm:$0xff]  ;;  %481 = vmatpush1.bf16.msra.mxu0 %v480_v7  ;;  %v486_v17 = vpack.c.bf16 %v173_v15, %v171_v14  ;;  %v172_v18 = vld [vmem:[#allocation7 + $0x30] sm:$0xff]  ;;  %v175_v19 = vld [vmem:[#allocation7 + $0x48] sm:$0xff]  ;;  %p677_p4 = scmp.ne.s32.totalorder %s431_s12, %s676_s13  ;;  %p682_p6 = scmp.lt.s32.totalorder %s676_s13, %s676_s13 }
  0x4f   :  { %v177_v20 = vld [vmem:[#allocation7 + $0x58] sm:$0xff]  ;;  %483 = vmatprep.subr.bf16.mxu1 %v482_v12  ;;  %v488_v21 = vpack.c.bf16 %v172_v18, %v170_v16  ;;  %v174_v23 = vld [vmem:[#allocation7 + $0x40] sm:$0xff]  ;;  %v176_v24 = vld [vmem:[#allocation7 + $0x50] sm:$0xff] }
  0x50   :  { %485 = vmatpush1.bf16.msra.mxu1 %v484_v13  ;;  %v490_v22 = vpack.c.bf16 %v177_v20, %v175_v19  ;;  %v179_v25 = vld [vmem:[#allocation7 + $0x68] sm:$0xff]  ;;  %v181_v26 = vld [vmem:[#allocation7 + $0x78] sm:$0xff]  ;;  %v492_v27 = vpack.c.bf16 %v176_v24, %v174_v23  ;;  %v178_v29 = vld [vmem:[#allocation7 + $0x60] sm:$0xff]  ;;  %p683_p7 = por %p682_p6, %p681_p5 }
  0x51   :  { %441 = vmatmul.mubr.msk.f32.vlgmr.msra.gmra.mrb[0].mxu0 %vm89_vm0, %v71_v8  ;;  %487 = vmatprep.subr.bf16.mxu1 %v486_v17  ;;  %v494_v28 = vpack.c.bf16 %v181_v26, %v179_v25  ;;  %v180_v30 = vld [vmem:[#allocation7 + $0x70] sm:$0xff]  ;;  %v183_v31 = vld [vmem:[#allocation7 + $0x88] sm:$0xff]  ;;  %v185_v32 = vld [vmem:[#allocation7 + $0x98] sm:$0xff] }
  0x52   :  { %v496_v33 = vpack.c.bf16 %v180_v30, %v178_v29  ;;  %v498_v34 = vpack.c.bf16 %v185_v32, %v183_v31  ;;  %v182_v35 = vld [vmem:[#allocation7 + $0x80] sm:$0xff]  ;;  %v184_v36 = vld [vmem:[#allocation7 + $0x90] sm:$0xff]  ;;  %v187_v37 = vld [vmem:[#allocation7 + $0xa8] sm:$0xff]  ;;  %p684_p8 = pnand %p683_p7, %p677_p4 }
  0x53   :  { %v189_v38 = vld [vmem:[#allocation7 + $0xb8] sm:$0xff]  ;;  %v500_v39 = vpack.c.bf16 %v184_v36, %v182_v35  ;;  %v186_v41 = vld [vmem:[#allocation7 + $0xa0] sm:$0xff]  ;;  %v188_v42 = vld [vmem:[#allocation7 + $0xb0] sm:$0xff] }
  0x54   :  { %489 = vmatpush1.bf16.msra.mxu1 %v488_v21  ;;  %v502_v40 = vpack.c.bf16 %v189_v38, %v187_v37  ;;  %v191_v43 = vld [vmem:[#allocation7 + $0xc8] sm:$0xff]  ;;  %v193_v44 = vld [vmem:[#allocation7 + $0xd8] sm:$0xff]  ;;  %v504_v45 = vpack.c.bf16 %v188_v42, %v186_v41  ;;  %v190_v47 = vld [vmem:[#allocation7 + $0xc0] sm:$0xff] }
  0x55   :  { %491 = vmatprep.subr.bf16.mxu1 %v490_v22  ;;  %v506_v46 = vpack.c.bf16 %v193_v44, %v191_v43  ;;  %v192_v48 = vld [vmem:[#allocation7 + $0xd0] sm:$0xff]  ;;  %v195_v49 = vld [vmem:[#allocation7 + $0xe8] sm:$0xff]  ;;  %v197_v50 = vld [vmem:[#allocation7 + $0xf8] sm:$0xff] }
  0x56   :  { %v508_v51 = vpack.c.bf16 %v192_v48, %v190_v47  ;;  %v510_v52 = vpack.c.bf16 %v197_v50, %v195_v49  ;;  %v194_v53 = vld [vmem:[#allocation7 + $0xe0] sm:$0xff]  ;;  %v196_v54 = vld [vmem:[#allocation7 + $0xf0] sm:$0xff]  ;;  %v199_v55 = vld [vmem:[#allocation7 + $0x108] sm:$0xff] }
  0x57   :  { %v201_v56 = vld [vmem:[#allocation7 + $0x118] sm:$0xff]  ;;  %v512_v57 = vpack.c.bf16 %v196_v54, %v194_v53  ;;  %v198_v59 = vld [vmem:[#allocation7 + $0x100] sm:$0xff]  ;;  %v200_v60 = vld [vmem:[#allocation7 + $0x110] sm:$0xff] }
  0x58   :  { %493 = vmatpush1.bf16.msra.mxu1 %v492_v27  ;;  %v514_v58 = vpack.c.bf16 %v201_v56, %v199_v55  ;;  %v203_v61 = vld [vmem:[#allocation7 + $0x128] sm:$0xff]  ;;  %v205_v62 = vld [vmem:[#allocation7 + $0x138] sm:$0xff]  ;;  %v516_v63 = vpack.c.bf16 %v200_v60, %v198_v59  ;;  %v202_v1 = vld [vmem:[#allocation7 + $0x120] sm:$0xff] }
  0x59   :  { %495 = vmatprep.subr.bf16.mxu1 %v494_v28  ;;  %v518_v0 = vpack.c.bf16 %v205_v62, %v203_v61  ;;  %v204_v2 = vld [vmem:[#allocation7 + $0x130] sm:$0xff]  ;;  %v207_v3 = vld [vmem:[#allocation7 + $0x148] sm:$0xff]  ;;  %v209_v4 = vld [vmem:[#allocation7 + $0x158] sm:$0xff] }
  0x5a   :  { %v520_v5 = vpack.c.bf16 %v204_v2, %v202_v1  ;;  %v522_v6 = vpack.c.bf16 %v209_v4, %v207_v3  ;;  %v206_v7 = vld [vmem:[#allocation7 + $0x140] sm:$0xff]  ;;  %v208_v8 = vld [vmem:[#allocation7 + $0x150] sm:$0xff]  ;;  %v211_v9 = vld [vmem:[#allocation7 + $0x168] sm:$0xff] }
  0x5b   :  { %v213_v10 = vld [vmem:[#allocation7 + $0x178] sm:$0xff]  ;;  %v524_v11 = vpack.c.bf16 %v208_v8, %v206_v7  ;;  %v210_v13 = vld [vmem:[#allocation7 + $0x160] sm:$0xff]  ;;  %v212_v14 = vld [vmem:[#allocation7 + $0x170] sm:$0xff] }
  0x5c   :  { %497 = vmatpush1.bf16.msra.mxu1 %v496_v33  ;;  %v526_v12 = vpack.c.bf16 %v213_v10, %v211_v9  ;;  %v215_v15 = vld [vmem:[#allocation7 + $0x188] sm:$0xff]  ;;  %v217_v16 = vld [vmem:[#allocation7 + $0x198] sm:$0xff]  ;;  %v528_v17 = vpack.c.bf16 %v212_v14, %v210_v13  ;;  %v214_v19 = vld [vmem:[#allocation7 + $0x180] sm:$0xff] }
  0x5d   :  { %499 = vmatprep.subr.bf16.mxu1 %v498_v34  ;;  %v530_v18 = vpack.c.bf16 %v217_v16, %v215_v15  ;;  %v216_v20 = vld [vmem:[#allocation7 + $0x190] sm:$0xff]  ;;  %v219_v21 = vld [vmem:[#allocation7 + $0x1a8] sm:$0xff]  ;;  %v221_v22 = vld [vmem:[#allocation7 + $0x1b8] sm:$0xff]  ;;  %v79_v15 = vlaneseq }
  0x5e   :  { %v532_v23 = vpack.c.bf16 %v216_v20, %v214_v19  ;;  %v534_v24 = vpack.c.bf16 %v221_v22, %v219_v21  ;;  %v218_v25 = vld [vmem:[#allocation7 + $0x1a0] sm:$0xff]  ;;  %v220_v26 = vld [vmem:[#allocation7 + $0x1b0] sm:$0xff]  ;;  %v223_v27 = vld [vmem:[#allocation7 + $0x1c8] sm:$0xff] }
  0x5f   :  { %v225_v28 = vld [vmem:[#allocation7 + $0x1d8] sm:$0xff]  ;;  %v536_v29 = vpack.c.bf16 %v220_v26, %v218_v25  ;;  %v222_v31 = vld [vmem:[#allocation7 + $0x1c0] sm:$0xff]  ;;  %v224_v32 = vld [vmem:[#allocation7 + $0x1d0] sm:$0xff]  ;;  %v80_v16 = vshrl.u32 %v79_v15, 7 }
  0x60   :  { %501 = vmatpush1.bf16.msra.mxu1 %v500_v39  ;;  %v538_v30 = vpack.c.bf16 %v225_v28, %v223_v27  ;;  %v540_v33 = vpack.c.bf16 %v224_v32, %v222_v31  ;;  %v227_v34 = vld [vmem:[#allocation7 + $0x1e8] sm:$0xff]  ;;  %v229_v35 = vld [vmem:[#allocation7 + $0x1f8] sm:$0xff]  ;;  %v226_v37 = vld [vmem:[#allocation7 + $0x1e0] sm:$0xff] }
  0x61   :  { %503 = vmatprep.subr.bf16.mxu1 %v502_v40  ;;  %v542_v36 = vpack.c.bf16 %v229_v35, %v227_v34  ;;  %v228_v38 = vld [vmem:[#allocation7 + $0x1f0] sm:$0xff]  ;;  %v333_v41 = vld [vmem:[#allocation8 + $0x88] sm:$0xff]  ;;  %v318_v49 = vld [vmem:[#allocation8 + $0x10] sm:$0xff]  ;;  %v85_v19 = vsub.s32 1, %v80_v16 }
  0x62   :  { %v544_v39 = vpack.c.bf16 %v228_v38, %v226_v37  ;;  %v332_v40 = vld [vmem:[#allocation8 + $0x80] sm:$0xff]  ;;  %v317_v44 = vld [vmem:[#allocation8 + $0x8] sm:$0xff]  ;;  %v319_v50 = vld [vmem:[#allocation8 + $0x18] sm:$0xff] }
  0x63   :  { %v316_v42 = vld [vmem:[#allocation8] sm:$0xff]  ;;  %v546_v43 = vpack.c.bf16 %v333_v41, %v332_v40  ;;  %v552_v53 = vpack.c.bf16 %v319_v50, %v318_v49  ;;  %v321_v56 = vld [vmem:[#allocation8 + $0x28] sm:$0xff]  ;;  %v322_v61 = vld [vmem:[#allocation8 + $0x30] sm:$0xff] }
  0x64   :  { %505 = vmatpush1.bf16.msra.mxu1 %v504_v45  ;;  %v334_v45 = vld [vmem:[#allocation8 + $0x90] sm:$0xff]  ;;  %v548_v47 = vpack.c.bf16 %v317_v44, %v316_v42  ;;  %v320_v55 = vld [vmem:[#allocation8 + $0x20] sm:$0xff]  ;;  %v323_v62 = vld [vmem:[#allocation8 + $0x38] sm:$0xff] }
  0x65   :  { %507 = vmatprep.subr.bf16.mxu1 %v506_v46  ;;  %v335_v46 = vld [vmem:[#allocation8 + $0x98] sm:$0xff]  ;;  %547 = vmatprep.subr.bf16.mxu0 %v546_v43  ;;  %v556_v59 = vpack.c.bf16 %v321_v56, %v320_v55  ;;  %v560_v1 = vpack.c.bf16 %v323_v62, %v322_v61  ;;  %v324_v3 = vld [vmem:[#allocation8 + $0x40] sm:$0xff]  ;;  %v325_v4 = vld [vmem:[#allocation8 + $0x48] sm:$0xff] }
  0x66   :  { %v550_v48 = vpack.c.bf16 %v335_v46, %v334_v45  ;;  %549 = vmatpush3.bf16.msra.mxu0 %v548_v47  ;;  %v564_v7 = vpack.c.bf16 %v325_v4, %v324_v3  ;;  %v326_v9 = vld [vmem:[#allocation8 + $0x50] sm:$0xff]  ;;  %v327_v10 = vld [vmem:[#allocation8 + $0x58] sm:$0xff]  ;;  %v328_v28 = vld [vmem:[#allocation8 + $0x60] sm:$0xff] }
  0x67   :  { %v568_v13 = vpack.c.bf16 %v327_v10, %v326_v9  ;;  %v346_v31 = vld [vmem:[#allocation8 + $0xf0] sm:$0xff]  ;;  %v347_v32 = vld [vmem:[#allocation8 + $0xf8] sm:$0xff]  ;;  %v442_v47 = vld [vmem:[#allocation8 + $0x100] ss:$0 sm:$0xff] }
  0x68   :  { %509 = vmatpush1.bf16.msra.mxu1 %v508_v51  ;;  %v336_v51 = vld [vmem:[#allocation8 + $0xa0] sm:$0xff]  ;;  %551 = vmatprep.subr.bf16.mxu0 %v550_v48  ;;  %v330_v34 = vld [vmem:[#allocation8 + $0x70] sm:$0xff]  ;;  %v331_v35 = vld [vmem:[#allocation8 + $0x78] sm:$0xff] }
  0x69   :  { %511 = vmatprep.subr.bf16.mxu1 %v510_v52  ;;  %v337_v52 = vld [vmem:[#allocation8 + $0xa8] sm:$0xff]  ;;  %v231_v37 = vld [vmem:[#allocation7 + $0x200] ss:$8 sm:$0x3] }
  0x6a   :  { %v554_v54 = vpack.c.bf16 %v337_v52, %v336_v51  ;;  %553 = vmatpush3.bf16.msra.mxu0 %v552_v53 }
  0x6c   :  { %513 = vmatpush1.bf16.msra.mxu1 %v512_v57  ;;  %v338_v57 = vld [vmem:[#allocation8 + $0xb0] sm:$0xff]  ;;  %555 = vmatprep.subr.bf16.mxu0 %v554_v54 }
  0x6d   :  { %515 = vmatprep.subr.bf16.mxu1 %v514_v58  ;;  %v339_v58 = vld [vmem:[#allocation8 + $0xb8] sm:$0xff] }
  0x6e   :  { %v558_v60 = vpack.c.bf16 %v339_v58, %v338_v57  ;;  %557 = vmatpush3.bf16.msra.mxu0 %v556_v59 }
  0x70   :  { %517 = vmatpush1.bf16.msra.mxu1 %v516_v63  ;;  %v340_v63 = vld [vmem:[#allocation8 + $0xc0] sm:$0xff]  ;;  %559 = vmatprep.subr.bf16.mxu0 %v558_v60 }
  0x71   :  { %519 = vmatprep.subr.bf16.mxu1 %v518_v0  ;;  %v341_v0 = vld [vmem:[#allocation8 + $0xc8] sm:$0xff] }
  0x72   :  { %v562_v2 = vpack.c.bf16 %v341_v0, %v340_v63  ;;  %561 = vmatpush3.bf16.msra.mxu0 %v560_v1 }
  0x74   :  { %521 = vmatpush1.bf16.msra.mxu1 %v520_v5  ;;  %v342_v5 = vld [vmem:[#allocation8 + $0xd0] sm:$0xff]  ;;  %563 = vmatprep.subr.bf16.mxu0 %v562_v2 }
  0x75   :  { %523 = vmatprep.subr.bf16.mxu1 %v522_v6  ;;  %v343_v6 = vld [vmem:[#allocation8 + $0xd8] sm:$0xff] }
  0x76   :  { %v566_v8 = vpack.c.bf16 %v343_v6, %v342_v5  ;;  %565 = vmatpush3.bf16.msra.mxu0 %v564_v7 }
  0x78   :  { %525 = vmatpush1.bf16.msra.mxu1 %v524_v11  ;;  %v344_v11 = vld [vmem:[#allocation8 + $0xe0] sm:$0xff]  ;;  %567 = vmatprep.subr.bf16.mxu0 %v566_v8 }
  0x79   :  { %527 = vmatprep.subr.bf16.mxu1 %v526_v12  ;;  %v345_v12 = vld [vmem:[#allocation8 + $0xe8] sm:$0xff] }
  0x7a   :  { %v570_v14 = vpack.c.bf16 %v345_v12, %v344_v11  ;;  %569 = vmatpush3.bf16.msra.mxu0 %v568_v13 }
  0x7c   :  { %529 = vmatpush1.bf16.msra.mxu1 %v528_v17  ;;  %571 = vmatprep.subr.bf16.mxu0 %v570_v14  ;;  %v81_v17 = vsub.s32 0, %v80_v16 }
  0x7d   :  { %531 = vmatprep.subr.bf16.mxu1 %v530_v18  ;;  %v77_v18 = vld [vmem:[#allocation5 + $0x20] ss:$8 sm:$0x3] }
  0x7e   :  { %v82_v20 = vrot.slane %v77_v18, %v81_v17  ;;  %v86_v21 = vrot.slane %v77_v18, %v85_v19  ;;  %v236_v38 = vrot.slane %v231_v37, %v81_v17 }
  0x80   :  { %533 = vmatpush1.bf16.msra.mxu1 %v532_v23 }
  0x81   :  { %535 = vmatprep.subr.bf16.mxu1 %v534_v24 }
  0x84   :  { %537 = vmatpush1.bf16.msra.mxu1 %v536_v29  ;;  %v329_v29 = vld [vmem:[#allocation8 + $0x68] sm:$0xff] }
  0x85   :  { %539 = vmatprep.subr.bf16.mxu1 %v538_v30  ;;  %v572_v30 = vpack.c.bf16 %v329_v29, %v328_v28 }
  0x87   :  { %573 = vmatpush3.bf16.msra.mxu0 %v572_v30 }
  0x88   :  { %541 = vmatpush1.bf16.msra.mxu1 %v540_v33  ;;  %v574_v33 = vpack.c.bf16 %v347_v32, %v346_v31 }
  0x89   :  { %543 = vmatprep.subr.bf16.mxu1 %v542_v36  ;;  %v576_v36 = vpack.c.bf16 %v331_v35, %v330_v34 }
  0x8a   :  { %575 = vmatprep.subr.bf16.mxu0 %v574_v33 }
  0x8b   :  { %577 = vmatpush3.bf16.msra.mxu0 %v576_v36 }
  0x8c   :  { %545 = vmatpush1.bf16.msra.mxu1 %v544_v39  ;;  %v240_v39 = vrot.slane %v231_v37, %v85_v19 }
 0x124   :  { %v159_v22 = vpop.f32.mrb[0].mxu0 }
 0x125   :  { %v160_v23 = vadd.f32 %v159_v22, %v82_v20  ;;  %v161_v24 = vpop.f32.mrb[1].mxu0 }
 0x126   :  { %v162_v25 = vadd.f32 %v161_v24, %v86_v21 }
 0x127   :  { %v164_v27 = vmax.f32 %v160_v23, 0.0 }
 0x128   :  { %v165_v26 = vmax.f32 %v162_v25, 0.0 }
 0x12a   :  { %307 = vmatprep.mubr.f32.mxu1 %v165_v26 }
 0x12b   :  { %308 = vmatmul.mubr.f32.vlgmr.msra.gmra.mrb[0].mxu1 %v164_v27 }
 0x1fe   :  { %v309_v40 = vpop.f32.mrb[0].mxu1 }
 0x1ff   :  { %v310_v41 = vadd.f32 %v309_v40, %v236_v38  ;;  %v311_v42 = vpop.f32.mrb[1].mxu1 }
 0x200   :  { %v312_v43 = vadd.f32 %v311_v42, %v240_v39 }
 0x201   :  { %v314_v45 = vmax.f32 %v310_v41, 0.0 }
 0x202   :  { %v315_v44 = vmax.f32 %v312_v43, 0.0 }
 0x204   :  { %417 = vmatprep.mubr.f32.mxu0 %v315_v44 }
 0x205   :  { %418 = vmatmul.mubr.f32.vlgmr.msra.gmra.mrb[2].mxu0 %v314_v45 }
 0x2d8   :  { %v475_v46 = vpop.f32.mrb[2].mxu0 }
 0x2d9   :  { %v476_v48 = vpop.f32.mrb[3].mxu0 }
 0x2da   :  { %v477_v49 = vadd.f32 %v476_v48, %v475_v46 }
 0x2dc   :  { %v420_v50 = vadd.f32 %v477_v49, %v442_v47 }
 0x2de   :  { %423 = vst [vmem:[#allocation10] sm:$0xff] %v420_v50 }
 0x2df   :  { %687 = shalt.err (!%p684_p8)
}
 0x2e0   :  { %s688_s15 = scalar_lea.hbm %s811_s4, 128 }
 0x2e1   :  { %p689_p9 = scmp.ne.s32.totalorder %s811_s4, %s688_s15  ;;  %p692_p10 = scmp.lt.u32.totalorder %s688_s15, %s811_s4 }
 0x2e3   :  { %p694_p11 = pnand %p692_p10, %p689_p9 }
 0x2e5   :  { %697 = shalt.err (!%p694_p11)
}
 0x2e6   :  { %433 = dma.vmem_to_hbm [thread:$0]  %s431_s12, 128, %s811_s4, [#allocation4]  }
 0x2e7   :  { %704 = dma.done.wait [#allocation4], 128  }
 0x2e8   :  { %705 = vsyncadd [#allocation4], 4294967168 }
 0x2e9   :  { %437 = vsyncpa [#allocation3], 1 }
 0x2ea   :  { %438 = vsyncpa [#allocation6], 1 }
 0x2eb   :  { %439 = vsyncpa [#allocation9], 1 }
 0x2ec   :  { %440 = vsyncpa [#allocation4], 1 }

</bundles_post_ra>
